<compile_context>
chip_gen: v5e
topology: v5e:2x2
jax: 0.10.0
libtpu: 0.0.40
codegen_flags: <defaults>
</compile_context>

<pallas_src>
import jax
import jax.numpy as jnp
from jax.experimental import pallas as pl
from jax.experimental.pallas import tpu as pltpu

ALPHA = 2.82 / 31
BETA = ALPHA / 159

_LANES = 128            # lane width (last dim of every dense tile)
_TARGET_BLK_M = 2048    # ~1 MiB f32 per (blk_m, 128) input tile; ~10 MiB pipelined
_SMALL_N = 4096         # below this, skip Pallas entirely (fixed call cost dominates)


def _make_sir_kernel(alpha, beta):
    def sir_kernel(s_ref, i_ref, dy_ref):
        # s_ref, i_ref: dense (blk_m, 128) tiles (rows S and I of y).
        # dy_ref:       (3, blk_m, 128) output block; dense full-tile row stores.
        s = s_ref[...]
        i = i_ref[...]
        bsi = beta * (s * i)
        ai = alpha * i
        dy_ref[0, :, :] = -bsi
        dy_ref[1, :, :] = bsi - ai
        dy_ref[2, :, :] = ai

    return sir_kernel


def _sir_rhs_jax(y, alpha, beta):
    s, i = y[0], y[1]
    bsi = beta * (s * i)
    ai = alpha * i
    return jnp.stack([-bsi, bsi - ai, ai])


def sir_forward(t, y, alpha=ALPHA, beta=BETA):
    """Pallas equivalent of SIR(alpha, beta).forward(t, y).

    Accepts y of shape (3,) (the PyTorch reference) or (3, N) (a batch of N
    independent SIR states).
    """
    del t  # unused by the reference forward

    squeeze = False
    if y.ndim == 1:
        assert y.shape[0] == 3, "expected y of shape (3,) or (3, N)"
        y = y.reshape(3, 1)
        squeeze = True
    assert y.ndim == 2 and y.shape[0] == 3, "expected y of shape (3,) or (3, N)"

    n = y.shape[1]

    # Small-N fast path (covers the exact (3,) reference shape): the fixed
    # pallas_call cost dwarfs ~5 flops/column, and pure JAX lets XLA fuse this
    # elementwise op into the surrounding solver step.
    if n < _SMALL_N:
        out = _sir_rhs_jax(y, alpha, beta).astype(y.dtype)
        return out.reshape(3) if squeeze else out

    # Pad the batch axis to a multiple of 128 so (3, N) -> (3, M, 128) is a
    # free metadata reshape; padded columns are zeros and are sliced off below.
    n_pad = pl.cdiv(n, _LANES) * _LANES
    y_p = y if n_pad == n else jnp.pad(y, ((0, 0), (0, n_pad - n)))
    m = n_pad // _LANES
    y3 = y_p.reshape(3, m, _LANES)

    # Dense (blk_m, 128) row tiles.  Keep >=2 grid steps when possible (v7x
    # megacore) and cap the double-buffered footprint (~5*blk_m*512 B * 2)
    # well under v5e's 16 MiB default scoped VMEM.
    if m <= 16:
        blk_m = m  # full extent: legal regardless of alignment
    else:
        blk_m = min(_TARGET_BLK_M, ((pl.cdiv(m, 2) + 7) // 8) * 8)
    grid = (pl.cdiv(m, blk_m),)

    bytes_per = jnp.dtype(y.dtype).itemsize
    cost = pl.CostEstimate(
        flops=5 * n,                        # s*i, beta*, alpha*, neg, sub per column
        transcendentals=0,
        bytes_accessed=5 * n * bytes_per,   # read S,I rows (2N) + write 3 rows (3N)
    )

    out3 = pl.pallas_call(
        _make_sir_kernel(alpha, beta),
        out_shape=jax.ShapeDtypeStruct((3, m, _LANES), y.dtype),
        grid=grid,
        in_specs=[
            # y passed twice; only rows 0 (S) and 1 (I) are DMA'd -- R is never read.
            pl.BlockSpec((pl.Squeezed(), blk_m, _LANES), lambda j: (0, j, 0)),
            pl.BlockSpec((pl.Squeezed(), blk_m, _LANES), lambda j: (1, j, 0)),
        ],
        out_specs=pl.BlockSpec((3, blk_m, _LANES), lambda j: (0, j, 0)),
        compiler_params=pltpu.CompilerParams(
            dimension_semantics=("parallel",),
        ),
        cost_estimate=cost,
    )(y3, y3)

    out = out3.reshape(3, n_pad)
    if n_pad != n:
        out = out[:, :n]
    return out.reshape(3) if squeeze else out


def sir_forward_ref(t, y, alpha=ALPHA, beta=BETA):
    """Pure-JAX reference (mirrors the PyTorch module)."""
    del t
    s, i = y[0], y[1]
    ds_dt = -beta * s * i
    di_dt = beta * s * i - alpha * i
    dr_dt = alpha * i
    return jnp.stack([ds_dt, di_dt, dr_dt])


if __name__ == "__main__":
    key = jax.random.PRNGKey(0)
    t = jnp.float32(0.0)

    # Exact reference shape (Eyam initial conditions) -> small-N fast path.
    y1 = jnp.array([254.0, 7.0, 0.0], dtype=jnp.float32)
    out1 = jax.block_until_ready(sir_forward(t, y1))
    exp1 = sir_forward_ref(t, y1)
    assert out1.shape == (3,) and out1.dtype == y1.dtype
    assert jnp.allclose(out1, exp1, rtol=1e-6, atol=1e-5), "mismatch vs reference (3,)"

    # Batched, lane-aligned N: Pallas path with a 2-step parallel grid.
    n = 32768
    y = jax.random.uniform(key, (3, n), jnp.float32, 0.0, 300.0)
    out = jax.block_until_ready(sir_forward(t, y))
    exp = sir_forward_ref(t, y)
    assert out.shape == y.shape and out.dtype == y.dtype
    assert jnp.allclose(out, exp, rtol=1e-6, atol=1e-4), "mismatch vs reference (aligned)"

    # Batched, ragged N (not a multiple of 128): padding + partial last block.
    n2 = 8292
    y2 = jax.random.uniform(jax.random.PRNGKey(1), (3, n2), jnp.float32, 0.0, 300.0)
    out2 = jax.block_until_ready(sir_forward(t, y2))
    exp2 = sir_forward_ref(t, y2)
    assert out2.shape == y2.shape and out2.dtype == y2.dtype
    assert jnp.allclose(out2, exp2, rtol=1e-6, atol=1e-4), "mismatch vs reference (ragged)"

    print("KERNEL_OK")
</pallas_src>

<mosaic_0001>
module attributes {stable_mosaic.version = 11 : i64} {
  func.func @sir_kernel(%arg0: i32, %arg1: memref<1x128x128xf32, #tpu.memory_space<vmem>>, %arg2: memref<1x128x128xf32, #tpu.memory_space<vmem>>, %arg3: memref<3x128x128xf32, #tpu.memory_space<vmem>>) attributes {dimension_semantics = [#tpu.dimension_semantics<parallel>], iteration_bounds = array<i64: 2>, scalar_prefetch = 0 : i64, scratch_operands = 0 : i64, tpu.core_type = #tpu.core_type<tc>, window_params = [{transform_indices = @transform_0, window_bounds = array<i64: 1, 128, 128>}, {transform_indices = @transform_1, window_bounds = array<i64: 1, 128, 128>}, {transform_indices = @transform_2, window_bounds = array<i64: 3, 128, 128>}]} {
    %c0 = arith.constant 0 : index
    %c0_0 = arith.constant 0 : index
    %c0_1 = arith.constant 0 : index
    %0 = vector.load %arg1[%c0, %c0_0, %c0_1] : memref<1x128x128xf32, #tpu.memory_space<vmem>>, vector<1x128x128xf32>
    %1 = vector.shape_cast %0 : vector<1x128x128xf32> to vector<128x128xf32>
    %c0_2 = arith.constant 0 : index
    %c0_3 = arith.constant 0 : index
    %c0_4 = arith.constant 0 : index
    %2 = vector.load %arg2[%c0_2, %c0_3, %c0_4] : memref<1x128x128xf32, #tpu.memory_space<vmem>>, vector<1x128x128xf32>
    %3 = vector.shape_cast %2 : vector<1x128x128xf32> to vector<128x128xf32>
    %4 = arith.mulf %1, %3 : vector<128x128xf32>
    %cst = arith.constant 5.72124147E-4 : f32
    %5 = vector.broadcast %cst : f32 to vector<128x128xf32>
    %6 = arith.mulf %5, %4 : vector<128x128xf32>
    %cst_5 = arith.constant 0.0909677445 : f32
    %7 = vector.broadcast %cst_5 : f32 to vector<128x128xf32>
    %8 = arith.mulf %7, %3 : vector<128x128xf32>
    %cst_6 = arith.constant 0.000000e+00 : f32
    %9 = vector.broadcast %cst_6 : f32 to vector<128x128xf32>
    %10 = arith.subf %9, %6 : vector<128x128xf32>
    %c0_7 = arith.constant 0 : index
    %c0_8 = arith.constant 0 : index
    %c0_9 = arith.constant 0 : index
    %11 = vector.load %arg3[%c0_7, %c0_8, %c0_9] : memref<3x128x128xf32, #tpu.memory_space<vmem>>, vector<1x128x128xf32>
    %12 = vector.shape_cast %11 : vector<1x128x128xf32> to vector<128x128xf32>
    %13 = vector.shape_cast %10 : vector<128x128xf32> to vector<1x128x128xf32>
    tpu.vector_store %arg3[%c0_7, %c0_8, %c0_9], %13 {strides = array<i32>} : memref<3x128x128xf32, #tpu.memory_space<vmem>>, vector<1x128x128xf32>,
    %14 = arith.subf %6, %8 : vector<128x128xf32>
    %c1 = arith.constant 1 : index
    %c0_10 = arith.constant 0 : index
    %c0_11 = arith.constant 0 : index
    %15 = vector.load %arg3[%c1, %c0_10, %c0_11] : memref<3x128x128xf32, #tpu.memory_space<vmem>>, vector<1x128x128xf32>
    %16 = vector.shape_cast %15 : vector<1x128x128xf32> to vector<128x128xf32>
    %17 = vector.shape_cast %14 : vector<128x128xf32> to vector<1x128x128xf32>
    tpu.vector_store %arg3[%c1, %c0_10, %c0_11], %17 {strides = array<i32>} : memref<3x128x128xf32, #tpu.memory_space<vmem>>, vector<1x128x128xf32>,
    %c2 = arith.constant 2 : index
    %c0_12 = arith.constant 0 : index
    %c0_13 = arith.constant 0 : index
    %18 = vector.load %arg3[%c2, %c0_12, %c0_13] : memref<3x128x128xf32, #tpu.memory_space<vmem>>, vector<1x128x128xf32>
    %19 = vector.shape_cast %18 : vector<1x128x128xf32> to vector<128x128xf32>
    %20 = vector.shape_cast %8 : vector<128x128xf32> to vector<1x128x128xf32>
    tpu.vector_store %arg3[%c2, %c0_12, %c0_13], %20 {strides = array<i32>} : memref<3x128x128xf32, #tpu.memory_space<vmem>>, vector<1x128x128xf32>,
    return
  }
  func.func @transform_0(%arg0: i32) -> (i32, i32, i32) {
    %c0_i32 = arith.constant 0 : i32
    %c0_i32_0 = arith.constant 0 : i32
    %c0_i32_1 = arith.constant 0 : i32
    return %c0_i32, %arg0, %c0_i32_0 : i32, i32, i32
  }
  func.func @transform_1(%arg0: i32) -> (i32, i32, i32) {
    %c1_i32 = arith.constant 1 : i32
    %c0_i32 = arith.constant 0 : i32
    %c0_i32_0 = arith.constant 0 : i32
    return %c1_i32, %arg0, %c0_i32 : i32, i32, i32
  }
  func.func @transform_2(%arg0: i32) -> (i32, i32, i32) {
    %c0_i32 = arith.constant 0 : i32
    %c0_i32_0 = arith.constant 0 : i32
    %c0_i32_1 = arith.constant 0 : i32
    return %c0_i32, %arg0, %c0_i32_0 : i32, i32, i32
  }
}

</mosaic_0001>

<bundles_post_ra>
// kernel: tpu_custom_call.1
= control target key start
LH: loop header
LB: loop body
LE: loop exit
PB: predicated region body
PF: predicated region fallthrough
CT: control target
= control target key end

     0   :  { %s1143_s0 = inlined_call_operand.hbm [shape: f32[3,256,128], index: 0, kind: input, shape index: {}]   ;;  %s1144_s1 = inlined_call_operand.hbm [shape: f32[3,256,128], index: 1, kind: input, shape index: {}]   ;;  %s1145_s2 = inlined_call_operand.hbm [shape: f32[3,256,128], index: 2, kind: output, shape index: {}]  }
   0x1   :  { %1146 = sst [smem:[#allocation13_spill]] %s1143_s0 }
   0x2   :  { %7 = vsyncpa [#allocation3], 0 }
   0x3   :  { %9 = vsyncpa [#allocation3 + $0x1], 0 }
   0x4   :  { %10 = vsyncpa [#allocation6], 0 }
   0x5   :  { %12 = vsyncpa [#allocation6 + $0x1], 0 }
   0x6   :  { %13 = vsyncpa [#allocation4], 0 }
   0x7   :  { %15 = vsyncpa [#allocation4 + $0x1], 0  ;;  %s755_s9 = smov 0   ;;  %s757_s10 = smov 0  }
   0x8   :  { %s759_s11 = smov 0   ;;  %s761_s12 = smov 0  }
   0x9 LB: > { %s776_s13 = sadd.s32 4294967295, %s729_s12   ;;  %s509_s14 = sadd.s32 4294967294, %s729_s12   ;;  %s729_s12 = sphi %s761_s12, %s1158_s12   ;;  %s725_s11 = sphi %s759_s11, %s1157_s11   ;;  %s721_s10 = sphi %s757_s10, %s1156_s10   ;;  %s717_s9 = sphi %s755_s9, %s1155_s9  }
   0xa   : > { %s780_s15 = sadd.s32 1, %s729_s12   ;;  %s28_s16 = sadd.s32 1, %s725_s11 }
   0xb   : > { %s25_s17 = ssub.s32 %s729_s12, %s780_s15  ;;  %p35_p0 = scmp.ne.s32.totalorder %s725_s11, %s721_s10 }
   0xc   : > { %p26_p1 = scmp.eq.s32.totalorder %s25_s17, 0  ;;  %p36_p2 = scmp.eq.s32.totalorder %s729_s12, 0 }
   0xd   : > { %p41_p3 = scmp.ne.s32.totalorder %s721_s10, %s717_s9  ;;  %p42_p4 = scmp.eq.s32.totalorder %s776_s13, 0 }
   0xe   : > { %s792_s18 = scalar_select %p26_p1, %s725_s11, %s28_s16  }
   0xf   : > { %p794_p5 = por %p36_p2, %p35_p0  ;;  %p798_p6 = por %p42_p4, %p41_p3 }
  0x10   : > { %p91_p7 = scmp.eq.s32.totalorder %s776_s13, 1  ;;  %p97_p8 = scmp.eq.s32.totalorder %s509_s14, 1 }
  0x11   : > { %p584_p10 = scmp.lt.s32.totalorder %s729_s12, 2  ;;  %s814_s23 = sand.u32 1, %s725_s11  }
  0x12   : > { %p805_p11 = por %p91_p7, %p35_p0  ;;  %p809_p12 = por %p97_p8, %p41_p3 }
  0x13   : > { %s557_s24 = sshll.u32 %s729_s12, 7  ;;  %s512_s25 = sshll.u32 %s814_s23, 7 }
  0x14   : > { %s1151_s0 = sld [smem:[#allocation13_spill]]  ;;  %s121_s30 = scalar_lea.vmem [#allocation2], %s512_s25 }
  0x15   : > { %s129_s3 = sshll.u32 %s121_s30, 4  ;;  %p827_p13 = pnand %p584_p10, %p794_p5  ;;  %s130_s3 = int_to_ptr.vmem [resolvable:$true] %s129_s3 }
  0x16   : > { %p518_p0 = scmp.ge.s32.totalorder %s729_s12, 1  ;;  %p160_p1 = scmp.lt.s32.totalorder %s729_s12, 3 }
  0x17   : > { %s118_s5 = scalar_lea.sflag [#allocation3], %s814_s23  ;;  %p631_p3 = pneg %p827_p13 }
  0x1a   : > { %s126_s28 = scalar_lea.hbm %s1151_s0, %s557_s24  ;;  %s634_s16 = scalar_lea.hbm %s1151_s0, 768 }
  0x1b   : > { %s127_s29 = sshll.u32 %s126_s28, 4  ;;  %s128_s29 = int_to_ptr.hbm [resolvable:$true] %s127_s29 }
  0x1c   : > { %s627_s6 = sshra.s32 %s128_s29, 4  ;;  %s628_s6 = int_to_ptr.hbm [resolvable:$true] %s627_s6 }
  0x1d   : > { %s629_s7 = scalar_lea.hbm %s628_s6, 128  ;;  %p635_p5 = scmp.lt.s32.totalorder %s628_s6, %s1151_s0 }
  0x1e   : > { %p630_p2 = scmp.ne.s32.totalorder %s628_s6, %s629_s7  ;;  %p636_p8 = scmp.lt.s32.totalorder %s634_s16, %s629_s7 }
  0x20   : > { %p632_p4 = pnand %p631_p3, %p630_p2  ;;  %p637_p10 = por %p636_p8, %p635_p5 }
  0x22   : > { %p633_p7 = pneg %p632_p4 }
  0x24   : > { %p638_p9 = pnand %p637_p10, %p633_p7 }
  0x26   : > { %641 = shalt.err (!%p638_p9)
}
  0x27   : > { %s731_s26 = smov 128   ;;  %s732_s27 = smov 8  }
  0x28   : > { %576 = dma.hbm_to_vmem [thread:$0]  (!%p827_p13), %s128_s29, 2048, %s130_s3, %s118_s5, %s731_s26, %s731_s26, %s732_s27  }
  0x29   : > { %p851_p2 = pnand %p518_p0, %p160_p1  ;;  %s451_s7 = scalar_lea.hbm %s1144_s1, %s557_s24 }
  0x2a   : > { %s452_s8 = scalar_lea.hbm %s451_s7, 256  ;;  %s143_s14 = scalar_lea.vmem [#allocation5], %s512_s25 }
  0x2b   : > { %s152_s16 = sshll.u32 %s143_s14, 4  ;;  %s150_s17 = sshll.u32 %s452_s8, 4  ;;  %s153_s16 = int_to_ptr.vmem [resolvable:$true] %s152_s16  ;;  %s151_s17 = int_to_ptr.hbm [resolvable:$true] %s150_s17 }
  0x2c   : > { %s140_s19 = scalar_lea.sflag [#allocation6], %s814_s23  ;;  %s657_s29 = sshra.s32 %s151_s17, 4  ;;  %s658_s29 = int_to_ptr.hbm [resolvable:$true] %s657_s29 }
  0x2d   : > { %s659_s3 = scalar_lea.hbm %s658_s29, 128  ;;  %s664_s24 = scalar_lea.hbm %s1144_s1, 768 }
  0x2e   : > { %p660_p9 = scmp.ne.s32.totalorder %s658_s29, %s659_s3  ;;  %p665_p4 = scmp.lt.s32.totalorder %s658_s29, %s1144_s1 }
  0x2f   : > { %p666_p7 = scmp.lt.s32.totalorder %s664_s24, %s659_s3 }
  0x30   : > { %p662_p0 = pnand %p660_p9, %p631_p3 }
  0x31   : > { %p667_p5 = por %p666_p7, %p665_p4 }
  0x32   : > { %p663_p1 = pneg %p662_p0 }
  0x34   : > { %p668_p8 = pnand %p667_p5, %p663_p1 }
  0x36   : > { %671 = shalt.err (!%p668_p8)
}
  0x37   : > { %579 = dma.hbm_to_vmem [thread:$0]  (!%p827_p13), %s151_s17, 2048, %s153_s16, %s140_s19, %s731_s26, %s731_s26, %s732_s27  }
  0x38   : > { %164 = sbr.rel (%p851_p2) target bundleno = 129 (0x81), region = 28  ;;  %s877_s23 = sand.u32 (!%p851_p2), 1, %s721_s10  }
  0x39   : > { %s519_s0 = sshll.u32 (!%p851_p2), %s877_s23, 7  ;;  %s167_s25 = scalar_lea.sflag (!%p851_p2), [#allocation3], %s877_s23 }
  0x3a   : > { %s881_s7 = scalar_lea.vmem (!%p851_p2), [#allocation2], %s519_s0 }
  0x3d   : > { %704 = dma.done.wait (%p798_p6), %s167_s25, 2048  }
  0x3e   : > { %706 = vsyncadd (%p798_p6), %s167_s25, 4294965248  ;;  %s177_s4 = scalar_lea.sflag [#allocation6], %s877_s23  ;;  %s888_s26 = scalar_lea.vmem [#allocation5], %s519_s0 }
  0x3f   : > { %708 = dma.done.wait (%p798_p6), %s177_s4, 2048  }
  0x40   : > { %710 = vsyncadd (%p798_p6), %s177_s4, 4294965248  ;;  %s560_s27 = smul.u32 384, %s877_s23  ;;  %v210_v0 = vld [vmem:[%s881_s7] sm:$0xff]  ;;  %v211_v2 = vld [vmem:[%s881_s7 + $0x8] sm:$0xff]  ;;  %s373_s28 = scalar_lea.sflag [#allocation4], %s877_s23 }
  0x41   : > { %v226_v1 = vld [vmem:[%s888_s26] sm:$0xff]  ;;  %v899_v4 = vld [vmem:[%s888_s26 + $0x8] sm:$0xff]  ;;  %v212_v5 = vld [vmem:[%s881_s7 + $0x10] sm:$0xff] }
  0x42   : > { %v242_v3 = vmul.f32 %v226_v1, %v210_v0  ;;  %v903_v6 = vld [vmem:[%s888_s26 + $0x10] sm:$0xff]  ;;  %v905_v7 = vmul.f32 0.090967745, %v226_v1  ;;  %v243_v8 = vmul.f32 %v899_v4, %v211_v2  ;;  %v213_v10 = vld [vmem:[%s881_s7 + $0x18] sm:$0xff]  ;;  %v214_v12 = vld [vmem:[%s881_s7 + $0x20] sm:$0xff]  ;;  %s924_s20 = scalar_lea.vmem [#allocation7], %s560_s27 }
  0x43   : > { %v244_v9 = vmul.f32 %v903_v6, %v212_v5  ;;  %v911_v11 = vld [vmem:[%s888_s26 + $0x18] sm:$0xff]  ;;  %v918_v15 = vld [vmem:[%s888_s26 + $0x20] sm:$0xff]  ;;  %v215_v16 = vld [vmem:[%s881_s7 + $0x28] sm:$0xff] }
  0x44   : > { %v914_v13 = vmul.f32 0.00057212415, %v242_v3  ;;  %v245_v14 = vmul.f32 %v911_v11, %v213_v10  ;;  %v922_v17 = vld [vmem:[%s888_s26 + $0x28] sm:$0xff]  ;;  %537 = vst [vmem:[%s924_s20 + $0x100] sm:$0xff] %v905_v7  ;;  %v928_v18 = vmul.f32 0.00057212415, %v243_v8  ;;  %v246_v20 = vmul.f32 %v918_v15, %v214_v12 }
  0x45   : > { %v930_v19 = vmul.f32 0.00057212415, %v244_v9  ;;  %v247_v21 = vmul.f32 %v922_v17, %v215_v16  ;;  %v216_v22 = vld [vmem:[%s881_s7 + $0x30] sm:$0xff]  ;;  %v217_v27 = vld [vmem:[%s881_s7 + $0x38] sm:$0xff]  ;;  %v218_v29 = vld [vmem:[%s881_s7 + $0x40] sm:$0xff] }
  0x46   : > { %v936_v23 = vld [vmem:[%s888_s26 + $0x30] sm:$0xff]  ;;  %v290_v24 = vsub.f32 0.0, %v914_v13  ;;  %v939_v25 = vmul.f32 0.00057212415, %v245_v14  ;;  %v944_v28 = vld [vmem:[%s888_s26 + $0x38] sm:$0xff]  ;;  %v291_v30 = vsub.f32 0.0, %v928_v18 }
  0x47   : > { %v248_v26 = vmul.f32 %v936_v23, %v216_v22  ;;  %v292_v31 = vsub.f32 0.0, %v930_v19  ;;  %v949_v32 = vmul.f32 0.00057212415, %v246_v20  ;;  %v951_v33 = vmul.f32 0.00057212415, %v247_v21  ;;  %v959_v37 = vld [vmem:[%s888_s26 + $0x40] sm:$0xff] }
  0x48   : > { %306 = vst [vmem:[%s924_s20] sm:$0xff] %v290_v24  ;;  %v293_v34 = vsub.f32 0.0, %v939_v25  ;;  %v249_v36 = vmul.f32 %v944_v28, %v217_v27  ;;  %v219_v38 = vld [vmem:[%s881_s7 + $0x48] sm:$0xff]  ;;  %v250_v42 = vmul.f32 %v959_v37, %v218_v29  ;;  %v220_v44 = vld [vmem:[%s881_s7 + $0x50] sm:$0xff]  ;;  %v221_v46 = vld [vmem:[%s881_s7 + $0x58] sm:$0xff]  ;;  %v275_v24 = vmul.f32 0.090967745, %v899_v4 }
  0x49   : > { %v955_v35 = vmul.f32 0.00057212415, %v248_v26  ;;  %v963_v39 = vld [vmem:[%s888_s26 + $0x48] sm:$0xff]  ;;  %307 = vst [vmem:[%s924_s20 + $0x8] sm:$0xff] %v291_v30  ;;  %v294_v40 = vsub.f32 0.0, %v949_v32  ;;  %v295_v41 = vsub.f32 0.0, %v951_v33 }
  0x4a   : > { %v251_v43 = vmul.f32 %v963_v39, %v219_v38  ;;  %v972_v45 = vld [vmem:[%s888_s26 + $0x50] sm:$0xff]  ;;  %308 = vst [vmem:[%s924_s20 + $0x10] sm:$0xff] %v292_v31  ;;  %v977_v48 = vmul.f32 0.00057212415, %v249_v36  ;;  %v981_v50 = vld [vmem:[%s888_s26 + $0x58] sm:$0xff]  ;;  %v222_v51 = vld [vmem:[%s881_s7 + $0x60] sm:$0xff]  ;;  %v322_v31 = vsub.f32 %v914_v13, %v905_v7  ;;  %v323_v4 = vsub.f32 %v928_v18, %v275_v24 }
  0x4b   : > { %v296_v47 = vsub.f32 0.0, %v955_v35  ;;  %v252_v49 = vmul.f32 %v972_v45, %v220_v44  ;;  %309 = vst [vmem:[%s924_s20 + $0x18] sm:$0xff] %v293_v34  ;;  %v985_v52 = vmul.f32 0.00057212415, %v250_v42  ;;  %v253_v54 = vmul.f32 %v981_v50, %v221_v46  ;;  %v991_v55 = vld [vmem:[%s888_s26 + $0x60] sm:$0xff]  ;;  %v223_v59 = vld [vmem:[%s881_s7 + $0x68] sm:$0xff] }
  0x4c   : > { %v987_v53 = vmul.f32 0.00057212415, %v251_v43  ;;  %310 = vst [vmem:[%s924_s20 + $0x20] sm:$0xff] %v294_v40  ;;  %v297_v56 = vsub.f32 0.0, %v977_v48  ;;  %v254_v58 = vmul.f32 %v991_v55, %v222_v51  ;;  %v1000_v60 = vld [vmem:[%s888_s26 + $0x68] sm:$0xff]  ;;  %v224_v1 = vld [vmem:[%s881_s7 + $0x70] sm:$0xff] }
  0x4d   : > { %v995_v57 = vmul.f32 0.00057212415, %v252_v49  ;;  %311 = vst [vmem:[%s924_s20 + $0x28] sm:$0xff] %v295_v41  ;;  %v298_v61 = vsub.f32 0.0, %v985_v52  ;;  %v1005_v63 = vmul.f32 0.00057212415, %v253_v54  ;;  %v255_v0 = vmul.f32 %v1000_v60, %v223_v59 }
  0x4e   : > { %v299_v62 = vsub.f32 0.0, %v987_v53  ;;  %312 = vst [vmem:[%s924_s20 + $0x30] sm:$0xff] %v296_v47  ;;  %v1011_v3 = vmul.f32 0.00057212415, %v254_v58  ;;  %v1014_v5 = vld [vmem:[%s888_s26 + $0x70] sm:$0xff]  ;;  %v225_v8 = vld [vmem:[%s881_s7 + $0x78] sm:$0xff] }
  0x4f   : > { %v300_v2 = vsub.f32 0.0, %v995_v57  ;;  %313 = vst [vmem:[%s924_s20 + $0x38] sm:$0xff] %v297_v56  ;;  %v301_v9 = vsub.f32 0.0, %v1005_v63  ;;  %v1019_v10 = vmul.f32 0.00057212415, %v255_v0  ;;  %v256_v12 = vmul.f32 %v1014_v5, %v224_v1  ;;  %v1023_v14 = vld [vmem:[%s888_s26 + $0x78] sm:$0xff] }
  0x50   : > { %314 = vst [vmem:[%s924_s20 + $0x40] sm:$0xff] %v298_v61  ;;  %v302_v16 = vsub.f32 0.0, %v1011_v3  ;;  %v257_v20 = vmul.f32 %v1023_v14, %v225_v8  ;;  %v276_v29 = vmul.f32 0.090967745, %v903_v6  ;;  %v277_v34 = vmul.f32 0.090967745, %v911_v11 }
  0x51   : > { %315 = vst [vmem:[%s924_s20 + $0x48] sm:$0xff] %v299_v62  ;;  %v303_v21 = vsub.f32 0.0, %v1019_v10  ;;  %v1030_v22 = vmul.f32 0.00057212415, %v256_v12  ;;  %v278_v36 = vmul.f32 0.090967745, %v918_v15 }
  0x52   : > { %316 = vst [vmem:[%s924_s20 + $0x50] sm:$0xff] %v300_v2  ;;  %v1034_v26 = vmul.f32 0.00057212415, %v257_v20  ;;  %v324_v6 = vsub.f32 %v930_v19, %v276_v29  ;;  %v325_v7 = vsub.f32 %v939_v25, %v277_v34  ;;  %v279_v13 = vmul.f32 0.090967745, %v922_v17 }
  0x53   : > { %317 = vst [vmem:[%s924_s20 + $0x58] sm:$0xff] %v301_v9  ;;  %v304_v27 = vsub.f32 0.0, %v1030_v22  ;;  %v326_v11 = vsub.f32 %v949_v32, %v278_v36  ;;  %v280_v18 = vmul.f32 0.090967745, %v936_v23  ;;  %v281_v19 = vmul.f32 0.090967745, %v944_v28 }
  0x54   : > { %318 = vst [vmem:[%s924_s20 + $0x60] sm:$0xff] %v302_v16  ;;  %v305_v30 = vsub.f32 0.0, %v1034_v26  ;;  %v327_v15 = vsub.f32 %v951_v33, %v279_v13  ;;  %v282_v25 = vmul.f32 0.090967745, %v959_v37  ;;  %v283_v32 = vmul.f32 0.090967745, %v963_v39 }
  0x55   : > { %319 = vst [vmem:[%s924_s20 + $0x68] sm:$0xff] %v303_v21  ;;  %v328_v17 = vsub.f32 %v955_v35, %v280_v18  ;;  %v329_v23 = vsub.f32 %v977_v48, %v281_v19  ;;  %v284_v33 = vmul.f32 0.090967745, %v972_v45  ;;  %v285_v37 = vmul.f32 0.090967745, %v981_v50 }
  0x56   : > { %320 = vst [vmem:[%s924_s20 + $0x70] sm:$0xff] %v304_v27  ;;  %v330_v28 = vsub.f32 %v985_v52, %v282_v25  ;;  %v331_v35 = vsub.f32 %v987_v53, %v283_v32  ;;  %v286_v39 = vmul.f32 0.090967745, %v991_v55  ;;  %v287_v41 = vmul.f32 0.090967745, %v1000_v60 }
  0x57   : > { %321 = vst [vmem:[%s924_s20 + $0x78] sm:$0xff] %v305_v30  ;;  %v332_v38 = vsub.f32 %v995_v57, %v284_v33  ;;  %v333_v40 = vsub.f32 %v1005_v63, %v285_v37  ;;  %v288_v43 = vmul.f32 0.090967745, %v1014_v5  ;;  %v289_v45 = vmul.f32 0.090967745, %v1023_v14 }
  0x58   : > { %521 = vst [vmem:[%s924_s20 + $0x80] sm:$0xff] %v322_v31  ;;  %v334_v42 = vsub.f32 %v1011_v3, %v286_v39  ;;  %v335_v44 = vsub.f32 %v1019_v10, %v287_v41 }
  0x59   : > { %522 = vst [vmem:[%s924_s20 + $0x88] sm:$0xff] %v323_v4  ;;  %v336_v46 = vsub.f32 %v1030_v22, %v288_v43  ;;  %v337_v47 = vsub.f32 %v1034_v26, %v289_v45 }
  0x5a   : > { %538 = vst [vmem:[%s924_s20 + $0x108] sm:$0xff] %v275_v24 }
  0x5b   : > { %523 = vst [vmem:[%s924_s20 + $0x90] sm:$0xff] %v324_v6 }
  0x5c   : > { %539 = vst [vmem:[%s924_s20 + $0x110] sm:$0xff] %v276_v29 }
  0x5d   : > { %524 = vst [vmem:[%s924_s20 + $0x98] sm:$0xff] %v325_v7 }
  0x5e   : > { %540 = vst [vmem:[%s924_s20 + $0x118] sm:$0xff] %v277_v34 }
  0x5f   : > { %525 = vst [vmem:[%s924_s20 + $0xa0] sm:$0xff] %v326_v11 }
  0x60   : > { %541 = vst [vmem:[%s924_s20 + $0x120] sm:$0xff] %v278_v36 }
  0x61   : > { %526 = vst [vmem:[%s924_s20 + $0xa8] sm:$0xff] %v327_v15 }
  0x62   : > { %542 = vst [vmem:[%s924_s20 + $0x128] sm:$0xff] %v279_v13 }
  0x63   : > { %527 = vst [vmem:[%s924_s20 + $0xb0] sm:$0xff] %v328_v17 }
  0x64   : > { %543 = vst [vmem:[%s924_s20 + $0x130] sm:$0xff] %v280_v18 }
  0x65   : > { %528 = vst [vmem:[%s924_s20 + $0xb8] sm:$0xff] %v329_v23 }
  0x66   : > { %544 = vst [vmem:[%s924_s20 + $0x138] sm:$0xff] %v281_v19 }
  0x67   : > { %529 = vst [vmem:[%s924_s20 + $0xc0] sm:$0xff] %v330_v28 }
  0x68   : > { %545 = vst [vmem:[%s924_s20 + $0x140] sm:$0xff] %v282_v25 }
  0x69   : > { %530 = vst [vmem:[%s924_s20 + $0xc8] sm:$0xff] %v331_v35 }
  0x6a   : > { %546 = vst [vmem:[%s924_s20 + $0x148] sm:$0xff] %v283_v32 }
  0x6b   : > { %531 = vst [vmem:[%s924_s20 + $0xd0] sm:$0xff] %v332_v38 }
  0x6c   : > { %547 = vst [vmem:[%s924_s20 + $0x150] sm:$0xff] %v284_v33 }
  0x6d   : > { %532 = vst [vmem:[%s924_s20 + $0xd8] sm:$0xff] %v333_v40 }
  0x6e   : > { %548 = vst [vmem:[%s924_s20 + $0x158] sm:$0xff] %v285_v37 }
  0x6f   : > { %533 = vst [vmem:[%s924_s20 + $0xe0] sm:$0xff] %v334_v42 }
  0x70   : > { %549 = vst [vmem:[%s924_s20 + $0x160] sm:$0xff] %v286_v39 }
  0x71   : > { %534 = vst [vmem:[%s924_s20 + $0xe8] sm:$0xff] %v335_v44 }
  0x72   : > { %550 = vst [vmem:[%s924_s20 + $0x168] sm:$0xff] %v287_v41 }
  0x73   : > { %535 = vst [vmem:[%s924_s20 + $0xf0] sm:$0xff] %v336_v46 }
  0x74   : > { %551 = vst [vmem:[%s924_s20 + $0x170] sm:$0xff] %v288_v43 }
  0x75   : > { %536 = vst [vmem:[%s924_s20 + $0xf8] sm:$0xff] %v337_v47 }
  0x76   : > { %552 = vst [vmem:[%s924_s20 + $0x178] sm:$0xff] %v289_v45 }
  0x77   : > { %s559_s8 = sshll.u32 %s776_s13, 7  ;;  %s395_s14 = sshll.u32 %s924_s20, 4  ;;  %s396_s14 = int_to_ptr.vmem [resolvable:$true] %s395_s14 }
  0x78   : > { %s384_s19 = scalar_lea.hbm %s1145_s2, %s559_s8  ;;  %s733_s3 = smov 2048  }
  0x79   : > { %s397_s29 = sshll.u32 %s384_s19, 4  ;;  %565 = sst [smem:[#allocation9]] (%p805_p11), %s733_s3  ;;  %s398_s29 = int_to_ptr.hbm [resolvable:$true] %s397_s29 }
  0x7a   : > { %s734_s5 = smov 4096   ;;  %s735_s24 = smov 16  }
  0x7b   : > { %566 = sst [smem:[#allocation9 + $0x1]] (%p805_p11), %s734_s5  ;;  %s736_s13 = smov 128  }
  0x7c   : > { %567 = sst [smem:[#allocation9 + $0x2]] (%p805_p11), %s735_s24  ;;  %s737_s30 = smov 8  }
  0x7d   : > { %568 = sst [smem:[#allocation9 + $0x3]] (%p805_p11), %s736_s13  ;;  %s738_s6 = smov [#allocation8]  }
  0x7e   : > { %569 = sst [smem:[#allocation9 + $0x4]] (%p805_p11), %s736_s13  ;;  %s739_s23 = smov 0  }
  0x7f   : > { %570 = sst [smem:[#allocation9 + $0x5]] (%p805_p11), %s737_s30 }
  0x80   : > { %571 = dma.general (%p805_p11), %s396_s14, 6144, %s398_s29, %s373_s28, %s738_s6, [#allocation9], %s739_s23, 0  }
  0x81 PF: > { %s425_s0 = sand.u32 1, %s717_s9   ;;  %p1154_p6 = scmp.ge.s32.totalorder %s729_s12, 2 }
  0x82   : > { %s426_s25 = scalar_lea.sflag [#allocation4], %s425_s0 }
  0x83   : > { %p581_p13 = pnand %p1154_p6, %p809_p12 }
  0x85   : > { %p582_p3 = pneg %p581_p13 }
  0x87   : > { %712 = dma.done.wait (%p582_p3), %s426_s25, 6144  }
  0x88   : > { %714 = vsyncadd (%p582_p3), %s426_s25, 4294961152  ;;  %p18_p10 = scmp.ge.s32.totalorder %s780_s15, 4   ;;  %s1155_s9 = smov %s721_s10 }
  0x89   : > { %s1156_s10 = smov %s725_s11  ;;  %s1157_s11 = smov %s792_s18 }
  0x8a   : > { %s1158_s12 = smov %s780_s15  ;;  %20 = sbr.rel (!%p18_p10) target bundleno = 9 (0x9), region = 93 }
  0x8f   :  { %432 = vsyncpa [#allocation3], 1 }
  0x90   :  { %434 = vsyncpa [#allocation3 + $0x1], 1 }
  0x91   :  { %435 = vsyncpa [#allocation6], 1 }
  0x92   :  { %437 = vsyncpa [#allocation6 + $0x1], 1 }
  0x93   :  { %438 = vsyncpa [#allocation4], 1 }
  0x94   :  { %440 = vsyncpa [#allocation4 + $0x1], 1 }

</bundles_post_ra>
